<compile_context>
chip_gen: v5e
topology: v5e:2x2
jax: 0.10.0
libtpu: 0.0.40
codegen_flags: <defaults>
</compile_context>

<pallas_src>
import jax
import jax.numpy as jnp
from jax.experimental import pallas as pl
from jax.experimental.pallas import tpu as pltpu


def _round_up(x, m):
    return (x + m - 1) // m * m


def _hidden_divisors(H):
    """Divisors of H that are multiples of 128 (descending); falls back to [H]."""
    if H % 128 != 0:
        return [H]
    return [d for d in range(H, 0, -128) if H % d == 0]


# ----------------------------- kernels --------------------------------------

def _ffn_resident_kernel(x_ref, w1_ref, b1_ref, w2_ref, b2_ref, o_ref):
    # x_ref: (TM, C)  w1_ref: (C, H)  b1_ref: (1, H)  w2_ref: (H, C)  b2_ref: (1, C)
    # Full hidden dim resident in VMEM: one fused Linear -> ReLU -> Linear per M tile.
    h = jnp.dot(x_ref[...], w1_ref[...], preferred_element_type=jnp.float32)
    h = jnp.maximum(h + b1_ref[...].astype(jnp.float32), 0.0)
    # Second matmul in the weight dtype (bf16 inputs -> 2x MXU rate); f32 accumulate.
    # NOTE: for bf16 inputs this rounds h to bf16 (intentional precision/throughput
    # tradeoff); for f32 inputs astype is a no-op.
    out = jnp.dot(h.astype(w2_ref.dtype), w2_ref[...],
                  preferred_element_type=jnp.float32)
    out = out + b2_ref[...].astype(jnp.float32)
    # Dropout(p) in eval / inference mode is identity.
    o_ref[...] = out.astype(o_ref.dtype)


def _ffn_streamed_kernel(x_ref, w1_ref, b1_ref, w2_ref, b2_ref, o_ref, acc_ref):
    # Hidden dim streamed in (C,TH)/(TH,C) slices along grid axis 1; f32 accumulator.
    k = pl.program_id(1)

    @pl.when(k == 0)
    def _():
        acc_ref[...] = jnp.zeros_like(acc_ref)

    h = jnp.dot(x_ref[...], w1_ref[...], preferred_element_type=jnp.float32)
    h = jnp.maximum(h + b1_ref[...].astype(jnp.float32), 0.0)
    acc_ref[...] += jnp.dot(h.astype(w2_ref.dtype), w2_ref[...],
                            preferred_element_type=jnp.float32)

    @pl.when(k == pl.num_programs(1) - 1)
    def _():
        o_ref[...] = (acc_ref[...] + b2_ref[...].astype(jnp.float32)).astype(o_ref.dtype)


# ----------------------------- wrapper ---------------------------------------

def feed_forward(x, w1, b1, w2, b2, *, block_m=None, block_h=None):
    """x: (B, T, C); w1: (C, H); b1: (H,); w2: (H, C); b2: (C,) -> (B, T, C).

    Weights/bias layout is (in, out): y = x @ W + b (same math as PyTorch's
    x @ W.T with W stored as (out, in)).
    """
    B, T, C = x.shape
    H = w1.shape[1]
    M = B * T

    x2d = x.reshape(M, C)
    b1_2d = b1.reshape(1, H)
    b2_2d = b2.reshape(1, C)

    x_isz = x.dtype.itemsize
    w_isz = w1.dtype.itemsize
    o_isz = x.dtype.itemsize

    # --- Per-core VMEM budget (generation-aware): 64 MiB on v7x, 128 MiB v5e/v6e.
    try:
        vmem_cap = int(pltpu.get_tpu_info().vmem_capacity_bytes)
    except Exception:
        vmem_cap = 64 * 1024 * 1024          # conservative (v7x-sized) fallback
    vmem_limit = min(int(vmem_cap * 0.8), 100 * 1024 * 1024)
    vmem_budget = int(vmem_limit * 0.85)     # headroom for compiler scratch/spills

    # --- M (row) tile: "parallel" axis, sublane-aligned (8 f32 / 16 bf16 rows).
    row_align = 16 if x.dtype == jnp.bfloat16 else 8
    m_cap = _round_up(M, row_align)
    default_bm = 1024 if block_m is None else block_m
    tm = min(_round_up(default_bm, row_align), m_cap)
    # Megacore (v7x): if the whole problem would be a single M tile but there is
    # enough work for two TensorCores, split the M axis in two.
    if m_cap // tm < 2 and M >= 512:
        tm = min(tm, _round_up((M + 1) // 2, row_align))

    # --- VMEM footprint models (bytes). Inputs/outputs are double-buffered by
    #     the pipeline; the (tm, *) f32 intermediates live in VMEM during compute.
    def resident_bytes(tm_):
        return (2 * (C * H + H * C) * w_isz          # W1, W2 buffer allocation
                + 2 * (H + C) * w_isz                # b1, b2
                + 2 * tm_ * C * (x_isz + o_isz)      # x tile in, out tile
                + tm_ * H * (4 + w_isz))             # f32 h (+ cast for matmul 2)

    def streamed_bytes(tm_, th_):
        return (2 * (C * th_ + th_ * C) * w_isz      # streamed W1/W2 slices
                + 2 * (th_ + C) * w_isz
                + 2 * tm_ * C * (x_isz + o_isz)
                + tm_ * C * 4                        # f32 accumulator scratch
                + tm_ * th_ * (4 + w_isz))           # f32 h slice (+ cast)

    # --- Prefer the weight-resident layout (th = H): weights read from HBM once
    #     for the whole call instead of once per M tile.
    resident = block_h is None or block_h >= H
    th = H
    if resident:
        while resident_bytes(tm) > vmem_budget and tm // 2 >= max(row_align, 128):
            tm = _round_up(tm // 2, row_align)
        resident = resident_bytes(tm) <= vmem_budget
    if not resident:
        # Streamed-H fallback: largest 128-multiple divisor of H that fits
        # (capped by block_h if given), shrinking tm if necessary.
        # TODO(synk): if weight DMAs are still exposed here, try
        # pipeline_mode=pl.Buffered(3) on the W1/W2 BlockSpecs (measure first).
        max_th = block_h if block_h is not None else 2048
        divs = _hidden_divisors(H)
        cands = [d for d in divs if d <= max_th] or [divs[-1]]
        th = cands[-1]
        for cand in cands:
            if streamed_bytes(tm, cand) <= vmem_budget:
                th = cand
                break
        while streamed_bytes(tm, th) > vmem_budget and tm // 2 >= row_align:
            tm = _round_up(tm // 2, row_align)

    tm = max(row_align, min(tm, m_cap))
    m_pad = _round_up(M, tm)
    m_tiles = m_pad // tm
    if m_pad != M:
        # Padded rows compute ReLU(b1) @ W2 + b2 (garbage); they are sliced off below.
        x2d = jnp.pad(x2d, ((0, m_pad - M), (0, 0)))

    flops = 2 * m_pad * C * H * 2  # two matmuls
    weight_reads = 1 if resident else m_tiles
    bytes_accessed = int(
        m_pad * C * x_isz                                  # x
        + weight_reads * (w1.size + w2.size) * w_isz       # weights (re-read if streamed)
        + (b1.size + b2.size) * w_isz
        + m_pad * C * o_isz)                               # output

    common = dict(
        out_shape=jax.ShapeDtypeStruct((m_pad, C), x.dtype),
        compiler_params=pltpu.CompilerParams(
            dimension_semantics=("parallel",) if resident else ("parallel", "arbitrary"),
            vmem_limit_bytes=vmem_limit),
        cost_estimate=pl.CostEstimate(
            flops=flops, transcendentals=0, bytes_accessed=bytes_accessed),
    )

    if resident:
        grid_spec = pltpu.PrefetchScalarGridSpec(
            num_scalar_prefetch=0,
            grid=(m_tiles,),
            in_specs=[
                pl.BlockSpec((tm, C), lambda i: (i, 0)),   # x tile
                pl.BlockSpec((C, H), lambda i: (0, 0)),    # W1 (VMEM-resident)
                pl.BlockSpec((1, H), lambda i: (0, 0)),    # b1
                pl.BlockSpec((H, C), lambda i: (0, 0)),    # W2 (VMEM-resident)
                pl.BlockSpec((1, C), lambda i: (0, 0)),    # b2
            ],
            out_specs=pl.BlockSpec((tm, C), lambda i: (i, 0)),
        )
        out2d = pl.pallas_call(_ffn_resident_kernel, grid_spec=grid_spec, **common)(
            x2d, w1, b1_2d, w2, b2_2d)
    else:
        h_tiles = H // th
        grid_spec = pltpu.PrefetchScalarGridSpec(
            num_scalar_prefetch=0,
            grid=(m_tiles, h_tiles),
            in_specs=[
                pl.BlockSpec((tm, C), lambda i, k: (i, 0)),   # x tile (resident over k)
                pl.BlockSpec((C, th), lambda i, k: (0, k)),   # W1 hidden slice
                pl.BlockSpec((1, th), lambda i, k: (0, k)),   # b1 hidden slice
                pl.BlockSpec((th, C), lambda i, k: (k, 0)),   # W2 hidden slice
                pl.BlockSpec((1, C), lambda i, k: (0, 0)),    # b2
            ],
            out_specs=pl.BlockSpec((tm, C), lambda i, k: (i, 0)),
            scratch_shapes=[pltpu.VMEM((tm, C), jnp.float32)],
        )
        out2d = pl.pallas_call(_ffn_streamed_kernel, grid_spec=grid_spec, **common)(
            x2d, w1, b1_2d, w2, b2_2d)

    if m_pad != M:
        out2d = out2d[:M]
    return out2d.reshape(B, T, C)


if __name__ == "__main__":
    # GPTConfig-like small shapes: n_embd=32 (hidden 4*32=128), dropout -> identity.
    # NOTE: C=32 (<128 lanes) is a toy width; real GPT dims (multiples of 128)
    # get lane-dense stores and full MXU occupancy automatically.
    B, T, C = 2, 8, 32
    H = 4 * C

    key = jax.random.PRNGKey(0)
    kx, kw1, kb1, kw2, kb2 = jax.random.split(key, 5)

    x = jax.random.normal(kx, (B, T, C), dtype=jnp.float32)
    # deterministic synthetic parameter init (roughly PyTorch Linear scale)
    w1 = jax.random.uniform(kw1, (C, H), jnp.float32, -1.0, 1.0) / jnp.sqrt(C)
    b1 = jax.random.uniform(kb1, (H,), jnp.float32, -1.0, 1.0) / jnp.sqrt(C)
    w2 = jax.random.uniform(kw2, (H, C), jnp.float32, -1.0, 1.0) / jnp.sqrt(H)
    b2 = jax.random.uniform(kb2, (C,), jnp.float32, -1.0, 1.0) / jnp.sqrt(H)

    ref = (jnp.maximum(x.reshape(-1, C) @ w1 + b1, 0.0) @ w2 + b2).reshape(B, T, C)

    # 1) f32, weight-resident fast path.
    out = feed_forward(x, w1, b1, w2, b2)
    jax.block_until_ready(out)
    assert out.shape == (B, T, C)
    assert jnp.allclose(out, ref, atol=1e-5, rtol=1e-5)

    # 2) Streamed-H fallback path (forced via small block_m / block_h).
    out_s = feed_forward(x, w1, b1, w2, b2, block_m=8, block_h=64)
    jax.block_until_ready(out_s)
    assert jnp.allclose(out_s, ref, atol=1e-5, rtol=1e-5)

    # 3) bf16 path — half HBM traffic / 2x MXU rate; f32 accumulation.
    #    h is rounded to bf16 before the second matmul (intentional tradeoff),
    #    hence the loose tolerance.
    xb, w1b, b1b, w2b, b2b = (a.astype(jnp.bfloat16) for a in (x, w1, b1, w2, b2))
    out_bf = feed_forward(xb, w1b, b1b, w2b, b2b)
    jax.block_until_ready(out_bf)
    ref_bf = (jnp.maximum(
        xb.astype(jnp.float32) @ w1b.astype(jnp.float32) + b1b.astype(jnp.float32),
        0.0) @ w2b.astype(jnp.float32) + b2b.astype(jnp.float32))
    assert jnp.allclose(out_bf.astype(jnp.float32), ref_bf, atol=5e-2, rtol=5e-2)

    print("KERNEL_OK")
</pallas_src>

<mosaic_0001>
module attributes {stable_mosaic.version = 11 : i64} {
  func.func @_ffn_resident_kernel(%arg0: i32, %arg1: memref<16x32xf32, #tpu.memory_space<vmem>>, %arg2: memref<32x128xf32, #tpu.memory_space<vmem>>, %arg3: memref<1x128xf32, #tpu.memory_space<vmem>>, %arg4: memref<128x32xf32, #tpu.memory_space<vmem>>, %arg5: memref<1x32xf32, #tpu.memory_space<vmem>>, %arg6: memref<16x32xf32, #tpu.memory_space<vmem>>) attributes {dimension_semantics = [#tpu.dimension_semantics<parallel>], iteration_bounds = array<i64: 1>, scalar_prefetch = 0 : i64, scratch_operands = 0 : i64, tpu.core_type = #tpu.core_type<tc>, window_params = [{transform_indices = @transform_0, window_bounds = array<i64: 16, 32>}, {pipeline_mode = #tpu.pipeline_mode<synchronous>, transform_indices = @transform_1, window_bounds = array<i64: 32, 128>}, {pipeline_mode = #tpu.pipeline_mode<synchronous>, transform_indices = @transform_2, window_bounds = array<i64: 1, 128>}, {pipeline_mode = #tpu.pipeline_mode<synchronous>, transform_indices = @transform_3, window_bounds = array<i64: 128, 32>}, {pipeline_mode = #tpu.pipeline_mode<synchronous>, transform_indices = @transform_4, window_bounds = array<i64: 1, 32>}, {transform_indices = @transform_5, window_bounds = array<i64: 16, 32>}]} {
    %c0 = arith.constant 0 : index
    %c0_0 = arith.constant 0 : index
    %0 = vector.load %arg1[%c0, %c0_0] : memref<16x32xf32, #tpu.memory_space<vmem>>, vector<16x32xf32>
    %c0_1 = arith.constant 0 : index
    %c0_2 = arith.constant 0 : index
    %1 = vector.load %arg2[%c0_1, %c0_2] : memref<32x128xf32, #tpu.memory_space<vmem>>, vector<32x128xf32>
    %cst = arith.constant dense<0.000000e+00> : vector<16x128xf32>
    %2 = tpu.matmul %0, %1, %cst {dimension_numbers = #tpu.dot_dimension_numbers<[1], [0], [0], [1], [0, 0, 1, 1], [], []>} : vector<16x32xf32>, vector<32x128xf32>, vector<16x128xf32> -> vector<16x128xf32>
    %c0_3 = arith.constant 0 : index
    %c0_4 = arith.constant 0 : index
    %3 = vector.load %arg3[%c0_3, %c0_4] : memref<1x128xf32, #tpu.memory_space<vmem>>, vector<1x128xf32>
    %4 = vector.broadcast %3 : vector<1x128xf32> to vector<16x128xf32>
    %5 = arith.addf %2, %4 : vector<16x128xf32>
    %cst_5 = arith.constant 0.000000e+00 : f32
    %6 = vector.broadcast %cst_5 : f32 to vector<16x128xf32>
    %7 = arith.maximumf %5, %6 : vector<16x128xf32>
    %c0_6 = arith.constant 0 : index
    %c0_7 = arith.constant 0 : index
    %8 = vector.load %arg4[%c0_6, %c0_7] : memref<128x32xf32, #tpu.memory_space<vmem>>, vector<128x32xf32>
    %cst_8 = arith.constant dense<0.000000e+00> : vector<16x32xf32>
    %9 = tpu.matmul %7, %8, %cst_8 {dimension_numbers = #tpu.dot_dimension_numbers<[1], [0], [0], [1], [0, 0, 1, 1], [], []>} : vector<16x128xf32>, vector<128x32xf32>, vector<16x32xf32> -> vector<16x32xf32>
    %c0_9 = arith.constant 0 : index
    %c0_10 = arith.constant 0 : index
    %10 = vector.load %arg5[%c0_9, %c0_10] : memref<1x32xf32, #tpu.memory_space<vmem>>, vector<1x32xf32>
    %11 = vector.broadcast %10 : vector<1x32xf32> to vector<16x32xf32>
    %12 = arith.addf %9, %11 : vector<16x32xf32>
    %c0_11 = arith.constant 0 : index
    %c0_12 = arith.constant 0 : index
    %13 = vector.load %arg6[%c0_11, %c0_12] : memref<16x32xf32, #tpu.memory_space<vmem>>, vector<16x32xf32>
    tpu.vector_store %arg6[%c0_11, %c0_12], %12 {strides = array<i32>} : memref<16x32xf32, #tpu.memory_space<vmem>>, vector<16x32xf32>,
    return
  }
  func.func @transform_0(%arg0: i32) -> (i32, i32) {
    %c0_i32 = arith.constant 0 : i32
    %c0_i32_0 = arith.constant 0 : i32
    return %arg0, %c0_i32 : i32, i32
  }
  func.func @transform_1(%arg0: i32) -> (i32, i32) {
    %c0_i32 = arith.constant 0 : i32
    %c0_i32_0 = arith.constant 0 : i32
    %c0_i32_1 = arith.constant 0 : i32
    return %c0_i32, %c0_i32_0 : i32, i32
  }
  func.func @transform_2(%arg0: i32) -> (i32, i32) {
    %c0_i32 = arith.constant 0 : i32
    %c0_i32_0 = arith.constant 0 : i32
    %c0_i32_1 = arith.constant 0 : i32
    return %c0_i32, %c0_i32_0 : i32, i32
  }
  func.func @transform_3(%arg0: i32) -> (i32, i32) {
    %c0_i32 = arith.constant 0 : i32
    %c0_i32_0 = arith.constant 0 : i32
    %c0_i32_1 = arith.constant 0 : i32
    return %c0_i32, %c0_i32_0 : i32, i32
  }
  func.func @transform_4(%arg0: i32) -> (i32, i32) {
    %c0_i32 = arith.constant 0 : i32
    %c0_i32_0 = arith.constant 0 : i32
    %c0_i32_1 = arith.constant 0 : i32
    return %c0_i32, %c0_i32_0 : i32, i32
  }
  func.func @transform_5(%arg0: i32) -> (i32, i32) {
    %c0_i32 = arith.constant 0 : i32
    %c0_i32_0 = arith.constant 0 : i32
    return %arg0, %c0_i32 : i32, i32
  }
}

</mosaic_0001>

<bundles_post_ra>
// kernel: tpu_custom_call.1
= control target key start
LH: loop header
LB: loop body
LE: loop exit
PB: predicated region body
PF: predicated region fallthrough
CT: control target
= control target key end

     0   :  { %vm31_vm0 = vcmask 261120   ;;  %s287_s0 = inlined_call_operand.vmem [shape: f32[16,32], index: 0, kind: input, shape index: {}]   ;;  %s288_s1 = inlined_call_operand.vmem [shape: f32[32,128], index: 1, kind: input, shape index: {}]   ;;  %s289_s2 = inlined_call_operand.vmem [shape: f32[1,128], index: 2, kind: input, shape index: {}]   ;;  %s290_s3 = inlined_call_operand.vmem [shape: f32[128,32], index: 3, kind: input, shape index: {}]   ;;  %s291_s4 = inlined_call_operand.vmem [shape: f32[1,32], index: 4, kind: input, shape index: {}]   ;;  %s292_s5 = inlined_call_operand.hbm [shape: f32[16,32], index: 5, kind: output, shape index: {}]  }
   0x1   :  { %v26_v0 = vld [vmem:[%s288_s1 + $0x18] sm:$0xff]  ;;  %v25_v1 = vld [vmem:[%s288_s1 + $0x10] sm:$0xff]  ;;  %v24_v2 = vld [vmem:[%s288_s1 + $0x8] sm:$0xff] }
   0x2   :  { %50 = vmatpush.msra.mxu0 %v26_v0  ;;  %v78_v3 = vld [vmem:[%s290_s3 + $0x78] sm:$0xff]  ;;  %v77_v4 = vld [vmem:[%s290_s3 + $0x70] sm:$0xff]  ;;  %v23_v5 = vld [vmem:[%s288_s1] sm:$0xff] }
   0x3   :  { %83 = vmatpush.msra.mxu1 %v78_v3  ;;  %v76_v6 = vld [vmem:[%s290_s3 + $0x68] sm:$0xff]  ;;  %128 = vmatpush.msra.mxu2 %v78_v3  ;;  %v21_v7 = vld [vmem:[%s287_s0] sm:$0xff] }
   0x4   :  { %51 = vmatpush.msra.mxu0 %v25_v1  ;;  %v75_v8 = vld [vmem:[%s290_s3 + $0x60] sm:$0xff] }
   0x5   :  { %84 = vmatpush.msra.mxu1 %v77_v4  ;;  %129 = vmatpush.msra.mxu2 %v77_v4 }
   0x6   :  { %52 = vmatpush.msra.mxu0 %v24_v2 }
   0x7   :  { %85 = vmatpush.msra.mxu1 %v76_v6 }
   0x8   :  { %53 = vmatpush.msra.mxu0 %v23_v5 }
   0x9   :  { %10 = vsyncpa [#allocation3], 0  ;;  %126 = vmatmul.msk.f32.vlgmr.msra.gmra.mxu0 %vm31_vm0, %v21_v7  ;;  %v74_v9 = vld [vmem:[%s290_s3 + $0x58] sm:$0xff]  ;;  %130 = vmatpush.msra.mxu2 %v76_v6  ;;  %v73_v10 = vld [vmem:[%s290_s3 + $0x50] sm:$0xff]  ;;  %s114_s15 = sshll.u32 %s292_s5, 4  ;;  %s176_s16 = smov 128   ;;  %s115_s15 = int_to_ptr.hbm [resolvable:$true] %s114_s15 }
   0xa   :  { %86 = vmatpush.msra.mxu1 %v75_v8  ;;  %v72_v11 = vld [vmem:[%s290_s3 + $0x48] sm:$0xff]  ;;  %v71_v13 = vld [vmem:[%s290_s3 + $0x40] sm:$0xff]  ;;  %v70_v14 = vld [vmem:[%s290_s3 + $0x38] sm:$0xff]  ;;  %s177_s17 = smov 8  }
   0xb   :  { %131 = vmatpush.msra.mxu2 %v75_v8  ;;  %v22_v12 = vld [vmem:[%s287_s0 + $0x8] sm:$0xff]  ;;  %v69_v15 = vld [vmem:[%s290_s3 + $0x30] sm:$0xff]  ;;  %v67_v17 = vld [vmem:[%s290_s3 + $0x20] sm:$0xff] }
   0xc   :  { %87 = vmatpush.msra.mxu1 %v74_v9  ;;  %v68_v16 = vld [vmem:[%s290_s3 + $0x28] sm:$0xff]  ;;  %v66_v18 = vld [vmem:[%s290_s3 + $0x18] sm:$0xff]  ;;  %v65_v19 = vld [vmem:[%s290_s3 + $0x10] sm:$0xff] }
   0xd   :  { %132 = vmatpush.msra.mxu2 %v74_v9  ;;  %v64_v20 = vld [vmem:[%s290_s3 + $0x8] sm:$0xff]  ;;  %v63_v21 = vld [vmem:[%s290_s3] sm:$0xff]  ;;  %s175_s3 = smov [#allocation2]  }
   0xe   :  { %88 = vmatpush.msra.mxu1 %v73_v10  ;;  %v147_v22 = vld [vmem:[%s289_s2] ss:$0 sm:$0xff]  ;;  %s112_s13 = sshll.u32 %s175_s3, 4  ;;  %s113_s13 = int_to_ptr.vmem [resolvable:$true] %s112_s13 }
   0xf   :  { %133 = vmatpush.msra.mxu2 %v73_v10  ;;  %v148_v29 = vld [vmem:[%s291_s4] ss:$0 sm:$0xff] }
  0x10   :  { %89 = vmatpush.msra.mxu1 %v72_v11 }
  0x11   :  { %127 = vmatmul.msk.f32.gmra.mxu0 %vm31_vm0, %v22_v12  ;;  %134 = vmatpush.msra.mxu2 %v72_v11 }
  0x12   :  { %90 = vmatpush.msra.mxu1 %v71_v13 }
  0x13   :  { %135 = vmatpush.msra.mxu2 %v71_v13 }
  0x14   :  { %91 = vmatpush.msra.mxu1 %v70_v14 }
  0x15   :  { %136 = vmatpush.msra.mxu2 %v70_v14 }
  0x16   :  { %92 = vmatpush.msra.mxu1 %v69_v15 }
  0x17   :  { %137 = vmatpush.msra.mxu2 %v69_v15 }
  0x18   :  { %93 = vmatpush.msra.mxu1 %v68_v16 }
  0x19   :  { %138 = vmatpush.msra.mxu2 %v68_v16 }
  0x1a   :  { %94 = vmatpush.msra.mxu1 %v67_v17 }
  0x1b   :  { %139 = vmatpush.msra.mxu2 %v67_v17 }
  0x1c   :  { %95 = vmatpush.msra.mxu1 %v66_v18 }
  0x1d   :  { %140 = vmatpush.msra.mxu2 %v66_v18 }
  0x1e   :  { %96 = vmatpush.msra.mxu1 %v65_v19 }
  0x1f   :  { %141 = vmatpush.msra.mxu2 %v65_v19 }
  0x20   :  { %97 = vmatpush.msra.mxu1 %v64_v20 }
  0x21   :  { %142 = vmatpush.msra.mxu2 %v64_v20 }
  0x22   :  { %98 = vmatpush.msra.mxu1 %v63_v21 }
  0x23   :  { %143 = vmatpush.msra.mxu2 %v63_v21 }
  0x86   :  { %v55_v23 = vpop.f32.mrf.mxu0 }
  0x87   :  { %v56_v24 = vadd.f32 %v147_v22, %v55_v23 }
  0x89   :  { %v61_v25 = vmax.f32 %v56_v24, 0.0 }
  0x8b   :  { %99 = vmatmul.f32.vlgmr.msra.gmra.mxu1 %v61_v25 }
  0x8e   :  { %v58_v26 = vpop.f32.mrf.mxu0 }
  0x8f   :  { %v59_v27 = vadd.f32 %v147_v22, %v58_v26 }
  0x91   :  { %v62_v28 = vmax.f32 %v59_v27, 0.0 }
  0x93   :  { %102 = vmatmul.f32.vlgmr.msra.gmra.mxu2 %v62_v28 }
 0x108   :  { %v100_v30 = vpop.f32.mrf.mxu1 }
 0x109   :  { %v101_v31 = vadd.f32 %v148_v29, %v100_v30 }
 0x10b   :  { %106 = vst.msk [vmem:[#allocation2] sm:$0xff] %vm31_vm0, %v101_v31 }
 0x116   :  { %v103_v32 = vpop.f32.mrf.mxu2 }
 0x117   :  { %v104_v33 = vadd.f32 %v148_v29, %v103_v32 }
 0x119   :  { %107 = vst.msk [vmem:[#allocation2 + $0x8] sm:$0xff] %vm31_vm0, %v104_v33 }
 0x11a   :  { %120 = dma.vmem_to_hbm [thread:$0]  %s113_s13, 256, %s115_s15, [#allocation3], %s176_s16, %s176_s16, %s177_s17  }
 0x11b   :  { %173 = dma.done.wait [#allocation3], 256  }
 0x11c   :  { %174 = vsyncadd [#allocation3], 4294967040 }
 0x11d   :  { %125 = vsyncpa [#allocation3], 1 }

</bundles_post_ra>
